<compile_context>
chip_gen: v6e
topology: v6e:2x2x1
jax: 0.10.0
libtpu: 0.0.40
codegen_flags: <defaults>
</compile_context>

<pallas_src>
import jax
import jax.numpy as jnp
from jax.experimental import pallas as pl
from jax.experimental.pallas import tpu as pltpu


def _round_up(x: int, m: int) -> int:
    return ((x + m - 1) // m) * m


def _make_kernel(k_total: int, tk: int, mxu_dtype):
    """Builds the fused Linear+Sigmoid kernel body (static shape params)."""
    k_rem = k_total % tk  # nonzero only when K > tk and tk does not divide K

    def kernel(x_ref, w_ref, b_ref, o_ref):
        k = pl.program_id(2)
        nk = pl.num_programs(2)

        # The output block is resident across the K axis (its index_map ignores
        # k), so it doubles as the f32 accumulator -- no scratch needed.
        @pl.when(k == 0)
        def _init():
            o_ref[...] = jnp.zeros_like(o_ref)

        x_tile = x_ref[...]
        w_tile = w_ref[...]

        if k_rem:
            # The last K block reads past the end of the array; those lanes are
            # undefined and MUST be zeroed before feeding the accumulation.
            valid = jnp.where(k == nk - 1, k_rem, tk)
            col = jax.lax.broadcasted_iota(jnp.int32, x_tile.shape, 1)
            x_tile = jnp.where(col < valid, x_tile, 0.0)

        if mxu_dtype != jnp.float32:
            # Optional bf16 MXU path (v6e/v7x); accumulation stays f32.
            x_tile = x_tile.astype(mxu_dtype)
            w_tile = w_tile.astype(mxu_dtype)

        o_ref[...] += jnp.dot(x_tile, w_tile, preferred_element_type=jnp.float32)

        # Bias + sigmoid exactly once per output tile, after the K reduction.
        @pl.when(k == nk - 1)
        def _finalize():
            o_ref[...] = jax.nn.sigmoid(o_ref[...] + b_ref[...])

    return kernel


def _pick_tiles(B, K, N, tm_max, tn_max, tk_max):
    # M tile (sublane dim of x/out): cover the whole batch when it fits -> the
    # (K, N) weight streams from HBM exactly once (dominant traffic term for a
    # typical FF layer).  Allow up to 2*tm_max when weights dominate.
    m_cap = 2 * tm_max if N >= 2 * B else tm_max
    tm = B if B <= m_cap else tm_max            # full dim OR multiple of 8
    # N tile (lane dim of w/bias/out).
    n_cap = 2 * tn_max if B >= 2 * N else tn_max
    tn = N if N <= n_cap else tn_max            # full dim OR multiple of 128
    # K tile (lane dim of x, sublane dim of w): full K when it fits -> no tail.
    tk = K if K <= tk_max else tk_max           # full dim OR multiple of 128

    # v7x megacore: keep >=2 blocks on a parallel axis when the problem is big
    # enough so both TensorCores get work.  Prefer splitting N (re-streams the
    # usually-smaller activations) over M (would re-stream the weight).
    if pl.cdiv(B, tm) == 1 and pl.cdiv(N, tn) == 1:
        if N >= 256:
            tn = _round_up(pl.cdiv(N, 2), 128)
        elif B >= 16:
            tm = _round_up(pl.cdiv(B, 2), 8)
    return tm, tn, tk


def sigmoid_ff(x, w_t, b, *, tm_max=512, tn_max=512, tk_max=1024,
               mxu_dtype=jnp.float32):
    """y = sigmoid(x @ w_t + b)   ==   nn.Linear(in, out) -> nn.Sigmoid().

    x:   (B, in_size)          f32
    w_t: (in_size, out_size)   f32  (transposed nn.Linear weight)
    b:   (out_size,)           f32
    mxu_dtype: jnp.float32 (exact PyTorch numerics) or jnp.bfloat16
               (faster MXU on v6e/v7x, ~1e-2 relative error).
    """
    x = x.astype(jnp.float32)
    w_t = w_t.astype(jnp.float32)
    B, K = x.shape
    K2, N = w_t.shape
    assert K == K2, "x / weight inner dims must match"

    tm, tn, tk = _pick_tiles(B, K, N, tm_max, tn_max, tk_max)
    gm, gn, gk = pl.cdiv(B, tm), pl.cdiv(N, tn), pl.cdiv(K, tk)

    b2d = b.astype(jnp.float32).reshape(1, N)   # reshape only -- no copy/pad

    cost = pl.CostEstimate(
        flops=2 * B * N * K,
        transcendentals=B * N,
        # x re-streamed once per N tile, w once per M tile, out written once.
        bytes_accessed=4 * (gn * B * K + gm * K * N + B * N + N),
    )

    kernel = _make_kernel(K, tk, mxu_dtype)

    return pl.pallas_call(
        kernel,
        out_shape=jax.ShapeDtypeStruct((B, N), jnp.float32),
        grid_spec=pltpu.PrefetchScalarGridSpec(
            num_scalar_prefetch=0,
            grid=(gm, gn, gk),
            in_specs=[
                pl.BlockSpec((tm, tk), lambda i, j, k: (i, k)),   # x tile
                pl.BlockSpec((tk, tn), lambda i, j, k: (k, j)),   # w tile
                pl.BlockSpec((1, tn), lambda i, j, k: (0, j)),    # bias tile
            ],
            out_specs=pl.BlockSpec((tm, tn), lambda i, j, k: (i, j)),
        ),
        compiler_params=pltpu.CompilerParams(
            dimension_semantics=("parallel", "parallel", "arbitrary"),
            # Tiles use <= ~17 MiB double-buffered; 48 MiB fits v7x's 64 MiB/TC
            # and is above v5e/v6e scoped defaults.
            vmem_limit_bytes=48 * 1024 * 1024,
        ),
        cost_estimate=cost,
    )(x, w_t, b2d)


if __name__ == "__main__":
    # Small shapes consistent with the module's forward: a plain FF layer.
    batch, in_size, out_size = 8, 32, 16

    key = jax.random.PRNGKey(0)
    k_x, k_w, k_b = jax.random.split(key, 3)

    # Deterministic init mimicking nn.Linear default: U(-1/sqrt(in), 1/sqrt(in)).
    bound = 1.0 / (in_size ** 0.5)
    w = jax.random.uniform(k_w, (out_size, in_size), jnp.float32, -bound, bound)
    b = jax.random.uniform(k_b, (out_size,), jnp.float32, -bound, bound)
    x = jax.random.normal(k_x, (batch, in_size), jnp.float32)

    # Kernel consumes the transposed weight (in_size, out_size).
    out = sigmoid_ff(x, w.T, b)
    out = jax.block_until_ready(out)

    # Reference check against plain JAX (same semantics as torch Linear+Sigmoid).
    ref = jax.nn.sigmoid(x @ w.T + b)
    assert out.shape == (batch, out_size)
    assert jnp.allclose(out, ref, atol=1e-5, rtol=1e-5)

    print("KERNEL_OK")
</pallas_src>

<mosaic_0001>
module attributes {stable_mosaic.version = 11 : i64} {
  func.func @kernel(%arg0: i32, %arg1: i32, %arg2: i32, %arg3: memref<8x32xf32, #tpu.memory_space<vmem>>, %arg4: memref<32x16xf32, #tpu.memory_space<vmem>>, %arg5: memref<1x16xf32, #tpu.memory_space<vmem>>, %arg6: memref<8x16xf32, #tpu.memory_space<vmem>>) attributes {dimension_semantics = [#tpu.dimension_semantics<parallel>, #tpu.dimension_semantics<parallel>, #tpu.dimension_semantics<arbitrary>], iteration_bounds = array<i64: 1, 1, 1>, scalar_prefetch = 0 : i64, scratch_operands = 0 : i64, tpu.core_type = #tpu.core_type<tc>, window_params = [{transform_indices = @transform_0, window_bounds = array<i64: 8, 32>}, {transform_indices = @transform_1, window_bounds = array<i64: 32, 16>}, {transform_indices = @transform_2, window_bounds = array<i64: 1, 16>}, {transform_indices = @transform_3, window_bounds = array<i64: 8, 16>}]} {
    %c0_i32 = arith.constant 0 : i32
    %0 = arith.cmpi eq, %arg2, %c0_i32 : i32
    %1 = arith.extui %0 : i1 to i32
    %c0_i32_0 = arith.constant 0 : i32
    %2 = arith.cmpi ne, %1, %c0_i32_0 : i32
    scf.if %2 {
      %cst_10 = arith.constant 0.000000e+00 : f32
      %12 = vector.broadcast %cst_10 : f32 to vector<8x16xf32>
      %c0_11 = arith.constant 0 : index
      %c0_12 = arith.constant 0 : index
      %13 = vector.load %arg6[%c0_11, %c0_12] : memref<8x16xf32, #tpu.memory_space<vmem>>, vector<8x16xf32>
      tpu.vector_store %arg6[%c0_11, %c0_12], %12 {strides = array<i32>} : memref<8x16xf32, #tpu.memory_space<vmem>>, vector<8x16xf32>,
    } else {
    }
    %c0 = arith.constant 0 : index
    %c0_1 = arith.constant 0 : index
    %3 = vector.load %arg3[%c0, %c0_1] : memref<8x32xf32, #tpu.memory_space<vmem>>, vector<8x32xf32>
    %c0_2 = arith.constant 0 : index
    %c0_3 = arith.constant 0 : index
    %4 = vector.load %arg4[%c0_2, %c0_3] : memref<32x16xf32, #tpu.memory_space<vmem>>, vector<32x16xf32>
    %c0_4 = arith.constant 0 : index
    %c0_5 = arith.constant 0 : index
    %5 = vector.load %arg6[%c0_4, %c0_5] : memref<8x16xf32, #tpu.memory_space<vmem>>, vector<8x16xf32>
    %cst = arith.constant dense<0.000000e+00> : vector<8x16xf32>
    %6 = tpu.matmul %3, %4, %cst {dimension_numbers = #tpu.dot_dimension_numbers<[1], [0], [0], [1], [0, 0, 1, 1], [], []>} : vector<8x32xf32>, vector<32x16xf32>, vector<8x16xf32> -> vector<8x16xf32>
    %7 = arith.addf %5, %6 : vector<8x16xf32>
    %c0_6 = arith.constant 0 : index
    %c0_7 = arith.constant 0 : index
    %8 = vector.load %arg6[%c0_6, %c0_7] : memref<8x16xf32, #tpu.memory_space<vmem>>, vector<8x16xf32>
    tpu.vector_store %arg6[%c0_6, %c0_7], %7 {strides = array<i32>} : memref<8x16xf32, #tpu.memory_space<vmem>>, vector<8x16xf32>,
    %c0_i32_8 = arith.constant 0 : i32
    %9 = arith.cmpi eq, %arg2, %c0_i32_8 : i32
    %10 = arith.extui %9 : i1 to i32
    %c0_i32_9 = arith.constant 0 : i32
    %11 = arith.cmpi ne, %10, %c0_i32_9 : i32
    scf.if %11 {
      %c0_10 = arith.constant 0 : index
      %c0_11 = arith.constant 0 : index
      %12 = vector.load %arg6[%c0_10, %c0_11] : memref<8x16xf32, #tpu.memory_space<vmem>>, vector<8x16xf32>
      %c0_12 = arith.constant 0 : index
      %c0_13 = arith.constant 0 : index
      %13 = vector.load %arg5[%c0_12, %c0_13] : memref<1x16xf32, #tpu.memory_space<vmem>>, vector<1x16xf32>
      %14 = vector.broadcast %13 : vector<1x16xf32> to vector<8x16xf32>
      %15 = arith.addf %12, %14 : vector<8x16xf32>
      %16 = arith.negf %15 : vector<8x16xf32>
      %17 = math.exp %16 : vector<8x16xf32>
      %cst_14 = arith.constant 1.000000e+00 : f32
      %18 = vector.broadcast %cst_14 : f32 to vector<8x16xf32>
      %19 = arith.addf %18, %17 : vector<8x16xf32>
      %20 = arith.divf %18, %19 : vector<8x16xf32>
      %c0_15 = arith.constant 0 : index
      %c0_16 = arith.constant 0 : index
      %21 = vector.load %arg6[%c0_15, %c0_16] : memref<8x16xf32, #tpu.memory_space<vmem>>, vector<8x16xf32>
      tpu.vector_store %arg6[%c0_15, %c0_16], %20 {strides = array<i32>} : memref<8x16xf32, #tpu.memory_space<vmem>>, vector<8x16xf32>,
    } else {
    }
    return
  }
  func.func @transform_0(%arg0: i32, %arg1: i32, %arg2: i32) -> (i32, i32) {
    %c0_i32 = arith.constant 0 : i32
    return %arg0, %arg2 : i32, i32
  }
  func.func @transform_1(%arg0: i32, %arg1: i32, %arg2: i32) -> (i32, i32) {
    %c0_i32 = arith.constant 0 : i32
    return %arg2, %arg1 : i32, i32
  }
  func.func @transform_2(%arg0: i32, %arg1: i32, %arg2: i32) -> (i32, i32) {
    %c0_i32 = arith.constant 0 : i32
    %c0_i32_0 = arith.constant 0 : i32
    return %c0_i32, %arg1 : i32, i32
  }
  func.func @transform_3(%arg0: i32, %arg1: i32, %arg2: i32) -> (i32, i32) {
    %c0_i32 = arith.constant 0 : i32
    return %arg0, %arg1 : i32, i32
  }
}

</mosaic_0001>

<bundles_post_ra>
// kernel: tpu_custom_call.1
= control target key start
LH: loop header
LB: loop body
LE: loop exit
PB: predicated region body
PF: predicated region fallthrough
CT: control target
= control target key end

     0   :  { %v185_v1 = vmov 0.0   ;;  %vm186_vm0 = vmmov 0   ;;  %vm19_vm1 = vcmask 130048   ;;  %s232_s0 = inlined_call_operand.vmem [shape: f32[8,32], index: 0, kind: input, shape index: {}]   ;;  %s233_s1 = inlined_call_operand.vmem [shape: f32[32,16], index: 1, kind: input, shape index: {}]   ;;  %s234_s2 = inlined_call_operand.vmem [shape: f32[1,16], index: 2, kind: input, shape index: {}]   ;;  %s235_s3 = inlined_call_operand.hbm [shape: f32[8,16], index: 3, kind: output, shape index: {}]  }
   0x1   :  { %v25_v0 = vld [vmem:[%s233_s1 + $0x18] sm:$0xff]  ;;  %145 = vmatprep.subr.mxu0 %v185_v1  ;;  %v24_v2 = vld [vmem:[%s233_s1 + $0x10] sm:$0xff]  ;;  %153 = vmatprep.mubr.msk.f32.mxu0 %vm186_vm0, %v185_v1 }
   0x2   :  { %8 = vsyncpa [#allocation3], 0  ;;  %146 = vmatpush3.msra.mxu0 %v25_v0  ;;  %20 = vst.msk [vmem:[#allocation2] sm:$0xff] %vm19_vm1, %v185_v1  ;;  %v23_v3 = vld [vmem:[%s233_s1 + $0x8] sm:$0xff]  ;;  %v22_v4 = vld [vmem:[%s233_s1] sm:$0xff]  ;;  %vm27_vm2 = vcmask 261120  }
   0x3   :  { %147 = vmatprep.subr.mxu0 %v185_v1  ;;  %v21_v5 = vld [vmem:[%s232_s0] sm:$0xff]  ;;  %s187_s0 = smov [#allocation2]  }
   0x4   :  { %148 = vmatpush3.msra.mxu0 %v24_v2  ;;  %v138_v10 = vld [vmem:[%s234_s2] ss:$0 sm:$0xff]  ;;  %s129_s1 = sshll.u32 %s187_s0, 4  ;;  %s130_s1 = int_to_ptr.vmem [resolvable:$true] %s129_s1 }
   0x5   :  { %149 = vmatprep.subr.mxu0 %v185_v1  ;;  %s163_s24 = scalar_lea.vmem %s130_s1, 128  ;;  %p168_p1 = scmp.lt.s32.totalorder %s130_s1, %s130_s1 }
   0x6   :  { %150 = vmatpush3.msra.mxu0 %v23_v3  ;;  %p164_p0 = scmp.ne.s32.totalorder %s130_s1, %s163_s24  ;;  %p169_p2 = scmp.lt.s32.totalorder %s163_s24, %s163_s24 }
   0x7   :  { %151 = vmatprep.subr.mxu0 %v185_v1 }
   0x8   :  { %152 = vmatpush3.msra.mxu0 %v22_v4  ;;  %p170_p3 = por %p169_p2, %p168_p1 }
   0x9   :  { %154 = vmatmul.mubr.msk.f32.vlgmr.msra.gmra.mxu0 %vm27_vm2, %v21_v5  ;;  %v26_v6 = vld [vmem:[#allocation2] sm:$0xff] }
   0xa   :  { %p171_p4 = pnand %p170_p3, %p164_p0 }
  0xc9   :  { %v97_v7 = vpop.f32.mrf.mxu0 }
  0xca   :  { %v101_v8 = vadd.f32 %v97_v7, %v26_v6 }
  0xcb   :  { %v155_v9 = vpop.f32.mrf.mxu0 }
  0xcc   :  { %103 = vst.msk [vmem:[#allocation2] sm:$0xff] %vm19_vm1, %v101_v8 }
  0xd3   :  { %v107_v11 = vld [vmem:[#allocation2] sm:$0xff] }
  0xd4   :  { %v115_v12 = vadd.f32 %v138_v10, %v107_v11 }
  0xd6   :  { %v139_v13 = vmul.f32 -1.442695, %v115_v12 }
  0xd8   :  { %159 = vpow2.f32 %v139_v13 }
  0xe5   :  { %v160_v14 = vpop.eup %159 }
  0xe6   :  { %v119_v15 = vadd.f32 1.0, %v160_v14 }
  0xe8   :  { %161 = vrcp.f32 %v119_v15 }
  0xf5   :  { %v162_v16 = vpop.eup %161 }
  0xf6   :  { %122 = vst.msk [vmem:[#allocation2] sm:$0xff] %vm19_vm1, %v162_v16 }
  0xf7   :  { %174 = shalt.err (!%p171_p4)
}
  0xf8   :  { %132 = dma.vmem_to_hbm [thread:$0]  %s130_s1, 128, %s235_s3, [#allocation3]  }
  0xf9   :  { %183 = dma.done.wait [#allocation3], 128  }
  0xfa   :  { %184 = vsyncadd [#allocation3], 4294967168 }
  0xfb   :  { %136 = vsyncpa [#allocation3], 1 }

</bundles_post_ra>
